<compile_context>
chip_gen: v5e
topology: v5e:2x2
jax: 0.10.0
libtpu: 0.0.40
codegen_flags: <defaults>
</compile_context>

<pallas_src>
import jax
import jax.numpy as jnp
from jax.experimental import pallas as pl
from jax.experimental.pallas import tpu as pltpu


def _qfunction_kernel(obs_ref, act_ref, cosf_ref, rep_ref, gatherb_ref,
                      onehotn_ref, tri_ref,
                      w1f_ref, w1a_ref, b1_ref, w2_ref, b2_ref, w3_ref, b3_ref,
                      wc_ref, bc_ref,
                      wq1_ref, bq1_ref, wq2_ref, bq2_ref,
                      wl_ref, ws_ref, wb_ref, bb_ref,
                      o_ref):
    f32 = jnp.float32

    # ---- shared MLP trunk: z = MLP(cat(obs, action)); concat fused as a
    #      split matmul accumulating into the same pre-activation. ------------
    h = (jnp.dot(obs_ref[...], w1f_ref[...], preferred_element_type=f32)
         + jnp.dot(act_ref[...], w1a_ref[...], preferred_element_type=f32)
         + b1_ref[...])
    h = jnp.maximum(h, 0.0)
    h = jnp.maximum(jnp.dot(h, w2_ref[...], preferred_element_type=f32)
                    + b2_ref[...], 0.0)
    z = jnp.dot(h, w3_ref[...], preferred_element_type=f32) + b3_ref[...]    # (B, E)

    # ---- cosine embedding of the sorted taus ------------------------------
    emb_tau = jnp.maximum(
        jnp.dot(cosf_ref[...], wc_ref[...], preferred_element_type=f32)
        + bc_ref[...], 0.0)                                                  # (B*N, E)

    # ---- replicate z per quantile via a 0/1 matmul (layout-safe "repeat") --
    z_rep = jnp.dot(rep_ref[...], z, preferred_element_type=f32)             # (B*N, E)
    emb = z_rep * emb_tau                                                    # (B*N, E)

    # ---- quantile head: Linear(E,256) -> ReLU -> Linear(256,1) -------------
    hq = jnp.maximum(
        jnp.dot(emb, wq1_ref[...], preferred_element_type=f32)
        + bq1_ref[...], 0.0)                                                 # (B*N, 256)
    # degenerate 256->1 head as a VPU lane-reduction (not an N=1 MXU matmul)
    l_col = jnp.sum(hq * wq2_ref[...], axis=-1, keepdims=True) + bq2_ref[...]  # (B*N, 1)

    # ---- scatter the (B*N, 1) column into a lane-dense (B, N) matrix -------
    logits = jnp.dot(gatherb_ref[...], l_col * onehotn_ref[...],
                     preferred_element_type=f32)                             # (B, N)

    # ---- monotonize: softmax over N, then cumsum (== upper-tri matmul) -----
    m = jnp.max(logits, axis=-1, keepdims=True)
    e = jnp.exp(logits - m)
    p = e / jnp.sum(e, axis=-1, keepdims=True)
    qr = jnp.dot(p, tri_ref[...], preferred_element_type=f32)                # (B, N)

    # ---- per-sample scale / bias heads (VPU reductions) --------------------
    z_prime = jnp.dot(z, wl_ref[...], preferred_element_type=f32)            # (B, K)
    a_pre = jnp.sum(z_prime * ws_ref[...], axis=-1, keepdims=True)           # (B, 1)
    alpha = jnp.maximum(a_pre, 0.0) + jnp.log(1.0 + jnp.exp(-jnp.abs(a_pre)))  # softplus
    beta = jnp.sum(z_prime * wb_ref[...], axis=-1, keepdims=True) + bb_ref[...]  # (B, 1)

    o_ref[...] = (qr * alpha + beta).astype(o_ref.dtype)


def qfunction_forward(feature, action, taus, params):
    """Pallas forward of Qfunction.forward(feature, action, taus) -> (B, N)."""
    feature = feature.astype(jnp.float32)
    action = action.astype(jnp.float32)
    taus = taus.astype(jnp.float32)
    B, N = taus.shape
    K = params["wc"].shape[0]
    BN = B * N

    # TODO(synk): differentiable_sort() is not defined in the spec; jnp.sort
    # reproduces its forward values (it only differs in how gradients flow).
    taus_sorted = jnp.sort(taus, axis=-1)
    # cos(pi * i * tau), i = 1..num_cosines (standard IQN convention). Computed
    # in the wrapper: trig has no guaranteed Mosaic lowering, and this tensor
    # is tiny ((B*N, K)).
    i_pi = jnp.pi * jnp.arange(1, K + 1, dtype=jnp.float32)
    cos_feat = jnp.cos(taus_sorted[:, :, None] * i_pi[None, None, :]).reshape(BN, K)

    # Tiny constant 0/1 matrices (< 3 KB total, constant under jit) that let the
    # kernel do "repeat z per quantile", "scatter (B*N,1)->(B,N)" and "cumsum"
    # as plain MXU matmuls -- no in-kernel reshape/iota/integer-div needed.
    row = jnp.arange(BN)
    rep = (row[:, None] // N == jnp.arange(B)[None, :]).astype(jnp.float32)       # (BN, B)
    gatherb = rep.T                                                               # (B, BN)
    onehotn = (row[:, None] % N == jnp.arange(N)[None, :]).astype(jnp.float32)    # (BN, N)
    tri = (jnp.arange(N)[:, None] <= jnp.arange(N)[None, :]).astype(jnp.float32)  # (N, N)

    args = (feature, action, cos_feat, rep, gatherb, onehotn, tri,
            params["w1f"], params["w1a"], params["b1"],
            params["w2"], params["b2"], params["w3"], params["b3"],
            params["wc"], params["bc"],
            params["wq1"], params["bq1"], params["wq2"], params["bq2"],
            params["wl"], params["ws"], params["wb"], params["bb"])

    # Single fused invocation, no grid: at these sizes everything fits in VMEM
    # and a grid would only add per-step launch/pipeline overhead.
    # TODO(synk): for production batch sizes, add a batch grid axis
    # (grid=(pl.cdiv(B, TB),), weight index_maps -> 0, "parallel" semantics).
    return pl.pallas_call(
        _qfunction_kernel,
        out_shape=jax.ShapeDtypeStruct((B, N), jnp.float32),
        in_specs=[pl.BlockSpec(memory_space=pltpu.MemorySpace.VMEM) for _ in args],
        out_specs=pl.BlockSpec(memory_space=pltpu.MemorySpace.VMEM),
    )(*args)


def init_params(key, feature_dim, action_dim, num_cosines, net_arch=(64, 64)):
    """Deterministic synthetic init (uniform +/- 1/sqrt(fan_in), like torch Linear)."""
    h1, h2 = net_arch
    emb = net_arch[-1]
    d_in = feature_dim + action_dim

    def lin(k, fan_in, fan_out, bias=True):
        kw, kb = jax.random.split(k)
        bound = float(fan_in) ** -0.5
        w = jax.random.uniform(kw, (fan_in, fan_out), jnp.float32, -bound, bound)
        b = (jax.random.uniform(kb, (1, fan_out), jnp.float32, -bound, bound)
             if bias else None)
        return w, b

    keys = jax.random.split(key, 8)
    w1, b1 = lin(keys[0], d_in, h1)
    w2, b2 = lin(keys[1], h1, h2)
    w3, b3 = lin(keys[2], h2, emb)            # MLP output layer -> embedding_dim
    wc, bc = lin(keys[3], num_cosines, emb)   # cosine embedding net
    wq1, bq1 = lin(keys[4], emb, 256)         # qr_logits hidden
    wq2_col, bq2 = lin(keys[5], 256, 1)       # qr_logits head
    wl, _ = lin(keys[6], emb, num_cosines, bias=False)
    k_s, k_b = jax.random.split(keys[7])
    ws_col, _ = lin(k_s, num_cosines, 1, bias=False)
    wb_col, bb = lin(k_b, num_cosines, 1)

    return {
        # layer-1 weight pre-split so obs/action never need a wrapper concat
        "w1f": w1[:feature_dim], "w1a": w1[feature_dim:], "b1": b1,
        "w2": w2, "b2": b2, "w3": w3, "b3": b3,
        "wc": wc, "bc": bc,
        "wq1": wq1, "bq1": bq1,
        "wq2": wq2_col.T,   # (1, 256) row -> VPU reduction in the kernel
        "bq2": bq2,         # (1, 1)
        "wl": wl,
        "ws": ws_col.T,     # (1, K)
        "wb": wb_col.T,     # (1, K)
        "bb": bb,           # (1, 1)
    }


def _reference_forward(feature, action, taus, params):
    """Pure-JAX mirror of the PyTorch Qfunction.forward for correctness checks."""
    taus_sorted = jnp.sort(taus, axis=-1)
    x = jnp.concatenate([feature, action], axis=-1)
    w1 = jnp.concatenate([params["w1f"], params["w1a"]], axis=0)
    h = jax.nn.relu(x @ w1 + params["b1"])
    h = jax.nn.relu(h @ params["w2"] + params["b2"])
    z = h @ params["w3"] + params["b3"]                                    # (B, E)

    B, N = taus.shape
    K = params["wc"].shape[0]
    i_pi = jnp.pi * jnp.arange(1, K + 1, dtype=jnp.float32)
    cosf = jnp.cos(taus_sorted[..., None] * i_pi)                          # (B, N, K)
    emb_tau = jax.nn.relu(cosf @ params["wc"] + params["bc"])              # (B, N, E)
    embedding = z[:, None, :] * emb_tau                                    # (B, N, E)
    hq = jax.nn.relu(embedding @ params["wq1"] + params["bq1"])            # (B, N, 256)
    logits = jnp.sum(hq * params["wq2"], axis=-1) + params["bq2"][0, 0]    # (B, N)
    p = jax.nn.softmax(logits, axis=-1)
    qr = jnp.cumsum(p, axis=-1)
    z_prime = z @ params["wl"]                                             # (B, K)
    alpha = jax.nn.softplus(jnp.sum(z_prime * params["ws"], axis=-1, keepdims=True))
    beta = jnp.sum(z_prime * params["wb"], axis=-1, keepdims=True) + params["bb"][0, 0]
    return qr * alpha + beta                                               # (B, N)


if __name__ == "__main__":
    key = jax.random.PRNGKey(0)
    k_obs, k_act, k_tau, k_par = jax.random.split(key, 4)

    B, feature_dim, action_dim = 8, 16, 4
    num_cosines, n_taus = 64, 8
    net_arch = (64, 64)

    obs = jax.random.normal(k_obs, (B, feature_dim), jnp.float32)
    action = jax.random.normal(k_act, (B, action_dim), jnp.float32)
    taus = jax.random.uniform(k_tau, (B, n_taus), jnp.float32)

    params = init_params(k_par, feature_dim, action_dim, num_cosines, net_arch)

    quantiles = qfunction_forward(obs, action, taus, params)
    quantiles = jax.block_until_ready(quantiles)

    ref = _reference_forward(obs, action, taus, params)
    assert quantiles.shape == (B, n_taus), quantiles.shape
    assert jnp.allclose(quantiles, ref, atol=2e-3, rtol=2e-3), float(
        jnp.max(jnp.abs(quantiles - ref)))

    print("KERNEL_OK")
</pallas_src>

<mosaic_0001>
module attributes {stable_mosaic.version = 11 : i64} {
  func.func @_qfunction_kernel(%arg0: memref<8x16xf32, #tpu.memory_space<vmem>>, %arg1: memref<8x4xf32, #tpu.memory_space<vmem>>, %arg2: memref<64x64xf32, #tpu.memory_space<vmem>>, %arg3: memref<64x8xf32, #tpu.memory_space<vmem>>, %arg4: memref<8x64xf32, #tpu.memory_space<vmem>>, %arg5: memref<64x8xf32, #tpu.memory_space<vmem>>, %arg6: memref<8x8xf32, #tpu.memory_space<vmem>>, %arg7: memref<16x64xf32, #tpu.memory_space<vmem>>, %arg8: memref<4x64xf32, #tpu.memory_space<vmem>>, %arg9: memref<1x64xf32, #tpu.memory_space<vmem>>, %arg10: memref<64x64xf32, #tpu.memory_space<vmem>>, %arg11: memref<1x64xf32, #tpu.memory_space<vmem>>, %arg12: memref<64x64xf32, #tpu.memory_space<vmem>>, %arg13: memref<1x64xf32, #tpu.memory_space<vmem>>, %arg14: memref<64x64xf32, #tpu.memory_space<vmem>>, %arg15: memref<1x64xf32, #tpu.memory_space<vmem>>, %arg16: memref<64x256xf32, #tpu.memory_space<vmem>>, %arg17: memref<1x256xf32, #tpu.memory_space<vmem>>, %arg18: memref<1x256xf32, #tpu.memory_space<vmem>>, %arg19: memref<1x1xf32, #tpu.memory_space<vmem>>, %arg20: memref<64x64xf32, #tpu.memory_space<vmem>>, %arg21: memref<1x64xf32, #tpu.memory_space<vmem>>, %arg22: memref<1x64xf32, #tpu.memory_space<vmem>>, %arg23: memref<1x1xf32, #tpu.memory_space<vmem>>, %arg24: memref<8x8xf32, #tpu.memory_space<vmem>>) attributes {dimension_semantics = [], scalar_prefetch = 0 : i64, scratch_operands = 0 : i64, tpu.core_type = #tpu.core_type<tc>} {
    %c0 = arith.constant 0 : index
    %c0_0 = arith.constant 0 : index
    %0 = vector.load %arg0[%c0, %c0_0] : memref<8x16xf32, #tpu.memory_space<vmem>>, vector<8x16xf32>
    %c0_1 = arith.constant 0 : index
    %c0_2 = arith.constant 0 : index
    %1 = vector.load %arg7[%c0_1, %c0_2] : memref<16x64xf32, #tpu.memory_space<vmem>>, vector<16x64xf32>
    %cst = arith.constant dense<0.000000e+00> : vector<8x64xf32>
    %2 = tpu.matmul %0, %1, %cst {dimension_numbers = #tpu.dot_dimension_numbers<[1], [0], [0], [1], [0, 0, 1, 1], [], []>} : vector<8x16xf32>, vector<16x64xf32>, vector<8x64xf32> -> vector<8x64xf32>
    %c0_3 = arith.constant 0 : index
    %c0_4 = arith.constant 0 : index
    %3 = vector.load %arg1[%c0_3, %c0_4] : memref<8x4xf32, #tpu.memory_space<vmem>>, vector<8x4xf32>
    %c0_5 = arith.constant 0 : index
    %c0_6 = arith.constant 0 : index
    %4 = vector.load %arg8[%c0_5, %c0_6] : memref<4x64xf32, #tpu.memory_space<vmem>>, vector<4x64xf32>
    %cst_7 = arith.constant dense<0.000000e+00> : vector<8x64xf32>
    %5 = tpu.matmul %3, %4, %cst_7 {dimension_numbers = #tpu.dot_dimension_numbers<[1], [0], [0], [1], [0, 0, 1, 1], [], []>} : vector<8x4xf32>, vector<4x64xf32>, vector<8x64xf32> -> vector<8x64xf32>
    %6 = arith.addf %2, %5 : vector<8x64xf32>
    %c0_8 = arith.constant 0 : index
    %c0_9 = arith.constant 0 : index
    %7 = vector.load %arg9[%c0_8, %c0_9] : memref<1x64xf32, #tpu.memory_space<vmem>>, vector<1x64xf32>
    %8 = vector.broadcast %7 : vector<1x64xf32> to vector<8x64xf32>
    %9 = arith.addf %6, %8 : vector<8x64xf32>
    %cst_10 = arith.constant 0.000000e+00 : f32
    %10 = vector.broadcast %cst_10 : f32 to vector<8x64xf32>
    %11 = arith.maximumf %9, %10 : vector<8x64xf32>
    %c0_11 = arith.constant 0 : index
    %c0_12 = arith.constant 0 : index
    %12 = vector.load %arg10[%c0_11, %c0_12] : memref<64x64xf32, #tpu.memory_space<vmem>>, vector<64x64xf32>
    %cst_13 = arith.constant dense<0.000000e+00> : vector<8x64xf32>
    %13 = tpu.matmul %11, %12, %cst_13 {dimension_numbers = #tpu.dot_dimension_numbers<[1], [0], [0], [1], [0, 0, 1, 1], [], []>} : vector<8x64xf32>, vector<64x64xf32>, vector<8x64xf32> -> vector<8x64xf32>
    %c0_14 = arith.constant 0 : index
    %c0_15 = arith.constant 0 : index
    %14 = vector.load %arg11[%c0_14, %c0_15] : memref<1x64xf32, #tpu.memory_space<vmem>>, vector<1x64xf32>
    %15 = vector.broadcast %14 : vector<1x64xf32> to vector<8x64xf32>
    %16 = arith.addf %13, %15 : vector<8x64xf32>
    %cst_16 = arith.constant 0.000000e+00 : f32
    %17 = vector.broadcast %cst_16 : f32 to vector<8x64xf32>
    %18 = arith.maximumf %16, %17 : vector<8x64xf32>
    %c0_17 = arith.constant 0 : index
    %c0_18 = arith.constant 0 : index
    %19 = vector.load %arg12[%c0_17, %c0_18] : memref<64x64xf32, #tpu.memory_space<vmem>>, vector<64x64xf32>
    %cst_19 = arith.constant dense<0.000000e+00> : vector<8x64xf32>
    %20 = tpu.matmul %18, %19, %cst_19 {dimension_numbers = #tpu.dot_dimension_numbers<[1], [0], [0], [1], [0, 0, 1, 1], [], []>} : vector<8x64xf32>, vector<64x64xf32>, vector<8x64xf32> -> vector<8x64xf32>
    %c0_20 = arith.constant 0 : index
    %c0_21 = arith.constant 0 : index
    %21 = vector.load %arg13[%c0_20, %c0_21] : memref<1x64xf32, #tpu.memory_space<vmem>>, vector<1x64xf32>
    %22 = vector.broadcast %21 : vector<1x64xf32> to vector<8x64xf32>
    %23 = arith.addf %20, %22 : vector<8x64xf32>
    %c0_22 = arith.constant 0 : index
    %c0_23 = arith.constant 0 : index
    %24 = vector.load %arg2[%c0_22, %c0_23] : memref<64x64xf32, #tpu.memory_space<vmem>>, vector<64x64xf32>
    %c0_24 = arith.constant 0 : index
    %c0_25 = arith.constant 0 : index
    %25 = vector.load %arg14[%c0_24, %c0_25] : memref<64x64xf32, #tpu.memory_space<vmem>>, vector<64x64xf32>
    %cst_26 = arith.constant dense<0.000000e+00> : vector<64x64xf32>
    %26 = tpu.matmul %24, %25, %cst_26 {dimension_numbers = #tpu.dot_dimension_numbers<[1], [0], [0], [1], [0, 0, 1, 1], [], []>} : vector<64x64xf32>, vector<64x64xf32>, vector<64x64xf32> -> vector<64x64xf32>
    %c0_27 = arith.constant 0 : index
    %c0_28 = arith.constant 0 : index
    %27 = vector.load %arg15[%c0_27, %c0_28] : memref<1x64xf32, #tpu.memory_space<vmem>>, vector<1x64xf32>
    %28 = vector.broadcast %27 : vector<1x64xf32> to vector<64x64xf32>
    %29 = arith.addf %26, %28 : vector<64x64xf32>
    %cst_29 = arith.constant 0.000000e+00 : f32
    %30 = vector.broadcast %cst_29 : f32 to vector<64x64xf32>
    %31 = arith.maximumf %29, %30 : vector<64x64xf32>
    %c0_30 = arith.constant 0 : index
    %c0_31 = arith.constant 0 : index
    %32 = vector.load %arg3[%c0_30, %c0_31] : memref<64x8xf32, #tpu.memory_space<vmem>>, vector<64x8xf32>
    %cst_32 = arith.constant dense<0.000000e+00> : vector<64x64xf32>
    %33 = tpu.matmul %32, %23, %cst_32 {dimension_numbers = #tpu.dot_dimension_numbers<[1], [0], [0], [1], [0, 0, 1, 1], [], []>} : vector<64x8xf32>, vector<8x64xf32>, vector<64x64xf32> -> vector<64x64xf32>
    %34 = arith.mulf %33, %31 : vector<64x64xf32>
    %c0_33 = arith.constant 0 : index
    %c0_34 = arith.constant 0 : index
    %35 = vector.load %arg16[%c0_33, %c0_34] : memref<64x256xf32, #tpu.memory_space<vmem>>, vector<64x256xf32>
    %cst_35 = arith.constant dense<0.000000e+00> : vector<64x256xf32>
    %36 = tpu.matmul %34, %35, %cst_35 {dimension_numbers = #tpu.dot_dimension_numbers<[1], [0], [0], [1], [0, 0, 1, 1], [], []>} : vector<64x64xf32>, vector<64x256xf32>, vector<64x256xf32> -> vector<64x256xf32>
    %c0_36 = arith.constant 0 : index
    %c0_37 = arith.constant 0 : index
    %37 = vector.load %arg17[%c0_36, %c0_37] : memref<1x256xf32, #tpu.memory_space<vmem>>, vector<1x256xf32>
    %38 = vector.broadcast %37 : vector<1x256xf32> to vector<64x256xf32>
    %39 = arith.addf %36, %38 : vector<64x256xf32>
    %cst_38 = arith.constant 0.000000e+00 : f32
    %40 = vector.broadcast %cst_38 : f32 to vector<64x256xf32>
    %41 = arith.maximumf %39, %40 : vector<64x256xf32>
    %c0_39 = arith.constant 0 : index
    %c0_40 = arith.constant 0 : index
    %42 = vector.load %arg18[%c0_39, %c0_40] : memref<1x256xf32, #tpu.memory_space<vmem>>, vector<1x256xf32>
    %43 = vector.broadcast %42 : vector<1x256xf32> to vector<64x256xf32>
    %44 = arith.mulf %41, %43 : vector<64x256xf32>
    %cst_41 = arith.constant dense<0.000000e+00> : vector<64xf32>
    %45 = vector.multi_reduction <add>, %44, %cst_41 [1] : vector<64x256xf32> to vector<64xf32>
    %46 = vector.shape_cast %45 : vector<64xf32> to vector<64x1xf32>
    %c0_42 = arith.constant 0 : index
    %c0_43 = arith.constant 0 : index
    %47 = vector.load %arg19[%c0_42, %c0_43] : memref<1x1xf32, #tpu.memory_space<vmem>>, vector<1x1xf32>
    %48 = vector.broadcast %47 : vector<1x1xf32> to vector<64x1xf32>
    %49 = arith.addf %46, %48 : vector<64x1xf32>
    %c0_44 = arith.constant 0 : index
    %c0_45 = arith.constant 0 : index
    %50 = vector.load %arg4[%c0_44, %c0_45] : memref<8x64xf32, #tpu.memory_space<vmem>>, vector<8x64xf32>
    %c0_46 = arith.constant 0 : index
    %c0_47 = arith.constant 0 : index
    %51 = vector.load %arg5[%c0_46, %c0_47] : memref<64x8xf32, #tpu.memory_space<vmem>>, vector<64x8xf32>
    %52 = vector.broadcast %49 : vector<64x1xf32> to vector<64x8xf32>
    %53 = arith.mulf %52, %51 : vector<64x8xf32>
    %cst_48 = arith.constant dense<0.000000e+00> : vector<8x8xf32>
    %54 = tpu.matmul %50, %53, %cst_48 {dimension_numbers = #tpu.dot_dimension_numbers<[1], [0], [0], [1], [0, 0, 1, 1], [], []>} : vector<8x64xf32>, vector<64x8xf32>, vector<8x8xf32> -> vector<8x8xf32>
    %cst_49 = arith.constant dense<0xFF800000> : vector<8xf32>
    %55 = vector.multi_reduction <maximumf>, %54, %cst_49 [1] : vector<8x8xf32> to vector<8xf32>
    %56 = vector.shape_cast %55 : vector<8xf32> to vector<8x1xf32>
    %57 = vector.broadcast %56 : vector<8x1xf32> to vector<8x8xf32>
    %58 = arith.subf %54, %57 : vector<8x8xf32>
    %59 = math.exp %58 : vector<8x8xf32>
    %cst_50 = arith.constant dense<0.000000e+00> : vector<8xf32>
    %60 = vector.multi_reduction <add>, %59, %cst_50 [1] : vector<8x8xf32> to vector<8xf32>
    %61 = vector.shape_cast %60 : vector<8xf32> to vector<8x1xf32>
    %62 = vector.broadcast %61 : vector<8x1xf32> to vector<8x8xf32>
    %63 = arith.divf %59, %62 : vector<8x8xf32>
    %c0_51 = arith.constant 0 : index
    %c0_52 = arith.constant 0 : index
    %64 = vector.load %arg6[%c0_51, %c0_52] : memref<8x8xf32, #tpu.memory_space<vmem>>, vector<8x8xf32>
    %cst_53 = arith.constant dense<0.000000e+00> : vector<8x8xf32>
    %65 = tpu.matmul %63, %64, %cst_53 {dimension_numbers = #tpu.dot_dimension_numbers<[1], [0], [0], [1], [0, 0, 1, 1], [], []>} : vector<8x8xf32>, vector<8x8xf32>, vector<8x8xf32> -> vector<8x8xf32>
    %c0_54 = arith.constant 0 : index
    %c0_55 = arith.constant 0 : index
    %66 = vector.load %arg20[%c0_54, %c0_55] : memref<64x64xf32, #tpu.memory_space<vmem>>, vector<64x64xf32>
    %cst_56 = arith.constant dense<0.000000e+00> : vector<8x64xf32>
    %67 = tpu.matmul %23, %66, %cst_56 {dimension_numbers = #tpu.dot_dimension_numbers<[1], [0], [0], [1], [0, 0, 1, 1], [], []>} : vector<8x64xf32>, vector<64x64xf32>, vector<8x64xf32> -> vector<8x64xf32>
    %c0_57 = arith.constant 0 : index
    %c0_58 = arith.constant 0 : index
    %68 = vector.load %arg21[%c0_57, %c0_58] : memref<1x64xf32, #tpu.memory_space<vmem>>, vector<1x64xf32>
    %69 = vector.broadcast %68 : vector<1x64xf32> to vector<8x64xf32>
    %70 = arith.mulf %67, %69 : vector<8x64xf32>
    %cst_59 = arith.constant dense<0.000000e+00> : vector<8xf32>
    %71 = vector.multi_reduction <add>, %70, %cst_59 [1] : vector<8x64xf32> to vector<8xf32>
    %72 = vector.shape_cast %71 : vector<8xf32> to vector<8x1xf32>
    %cst_60 = arith.constant 0.000000e+00 : f32
    %73 = vector.broadcast %cst_60 : f32 to vector<8x1xf32>
    %74 = arith.maximumf %72, %73 : vector<8x1xf32>
    %75 = math.absf %72 : vector<8x1xf32>
    %cst_61 = arith.constant 0.000000e+00 : f32
    %76 = vector.broadcast %cst_61 : f32 to vector<8x1xf32>
    %77 = arith.subf %76, %75 : vector<8x1xf32>
    %78 = math.exp %77 : vector<8x1xf32>
    %cst_62 = arith.constant 1.000000e+00 : f32
    %79 = vector.broadcast %cst_62 : f32 to vector<8x1xf32>
    %80 = arith.addf %79, %78 : vector<8x1xf32>
    %81 = math.log %80 : vector<8x1xf32>
    %82 = arith.addf %74, %81 : vector<8x1xf32>
    %c0_63 = arith.constant 0 : index
    %c0_64 = arith.constant 0 : index
    %83 = vector.load %arg22[%c0_63, %c0_64] : memref<1x64xf32, #tpu.memory_space<vmem>>, vector<1x64xf32>
    %84 = vector.broadcast %83 : vector<1x64xf32> to vector<8x64xf32>
    %85 = arith.mulf %67, %84 : vector<8x64xf32>
    %cst_65 = arith.constant dense<0.000000e+00> : vector<8xf32>
    %86 = vector.multi_reduction <add>, %85, %cst_65 [1] : vector<8x64xf32> to vector<8xf32>
    %87 = vector.shape_cast %86 : vector<8xf32> to vector<8x1xf32>
    %c0_66 = arith.constant 0 : index
    %c0_67 = arith.constant 0 : index
    %88 = vector.load %arg23[%c0_66, %c0_67] : memref<1x1xf32, #tpu.memory_space<vmem>>, vector<1x1xf32>
    %89 = vector.broadcast %88 : vector<1x1xf32> to vector<8x1xf32>
    %90 = arith.addf %87, %89 : vector<8x1xf32>
    %91 = vector.broadcast %82 : vector<8x1xf32> to vector<8x8xf32>
    %92 = arith.mulf %65, %91 : vector<8x8xf32>
    %93 = vector.broadcast %90 : vector<8x1xf32> to vector<8x8xf32>
    %94 = arith.addf %92, %93 : vector<8x8xf32>
    %c0_68 = arith.constant 0 : index
    %c0_69 = arith.constant 0 : index
    %95 = vector.load %arg24[%c0_68, %c0_69] : memref<8x8xf32, #tpu.memory_space<vmem>>, vector<8x8xf32>
    tpu.vector_store %arg24[%c0_68, %c0_69], %94 {strides = array<i32>} : memref<8x8xf32, #tpu.memory_space<vmem>>, vector<8x8xf32>,
    return
  }
}

</mosaic_0001>

<bundles_post_ra>
// kernel: tpu_custom_call.1
= control target key start
LH: loop header
LB: loop body
LE: loop exit
PB: predicated region body
PF: predicated region fallthrough
CT: control target
= control target key end

     0   :  { %s1641_s0 = inlined_call_operand.vmem [shape: f32[8,16], index: 0, kind: input, shape index: {}]   ;;  %s1642_s1 = inlined_call_operand.vmem [shape: f32[8,4], index: 1, kind: input, shape index: {}]   ;;  %s1643_s2 = inlined_call_operand.hbm [shape: f32[64,64], index: 2, kind: input, shape index: {}]   ;;  %s1644_s3 = inlined_call_operand.vmem [shape: f32[64,8], index: 3, kind: input, shape index: {}]   ;;  %s1645_s4 = inlined_call_operand.hbm [shape: f32[8,64], index: 4, kind: input, shape index: {}]   ;;  %s1646_s5 = inlined_call_operand.vmem [shape: f32[64,8], index: 5, kind: input, shape index: {}]   ;;  %s1647_s6 = inlined_call_operand.hbm [shape: f32[8,8], index: 6, kind: input, shape index: {}]   ;;  %s1648_s7 = inlined_call_operand.hbm [shape: f32[16,64], index: 7, kind: input, shape index: {}]   ;;  %s1649_s8 = inlined_call_operand.vmem [shape: f32[4,64], index: 8, kind: input, shape index: {}]   ;;  %s1650_s9 = inlined_call_operand.vmem [shape: f32[1,64], index: 9, kind: input, shape index: {}]   ;;  %s1651_s10 = inlined_call_operand.hbm [shape: f32[64,64], index: 10, kind: input, shape index: {}]   ;;  %s1652_s11 = inlined_call_operand.vmem [shape: f32[1,64], index: 11, kind: input, shape index: {}]   ;;  %s1653_s12 = inlined_call_operand.hbm [shape: f32[64,64], index: 12, kind: input, shape index: {}]   ;;  %s1654_s13 = inlined_call_operand.vmem [shape: f32[1,64], index: 13, kind: input, shape index: {}]   ;;  %s1655_s14 = inlined_call_operand.hbm [shape: f32[64,64], index: 14, kind: input, shape index: {}]   ;;  %s1656_s15 = inlined_call_operand.vmem [shape: f32[1,64], index: 15, kind: input, shape index: {}]   ;;  %s1657_s16 = inlined_call_operand.vmem [shape: f32[64,256], index: 16, kind: input, shape index: {}]   ;;  %s1658_s17 = inlined_call_operand.vmem [shape: f32[1,256], index: 17, kind: input, shape index: {}]   ;;  %s1659_s18 = inlined_call_operand.vmem [shape: f32[1,256], index: 18, kind: input, shape index: {}]   ;;  %s1660_s19 = inlined_call_operand.<no memory space> [shape: f32[1,1], index: 19, kind: input, shape index: {}]   ;;  %s1661_s20 = inlined_call_operand.hbm [shape: f32[64,64], index: 20, kind: input, shape index: {}]   ;;  %s1662_s21 = inlined_call_operand.vmem [shape: f32[1,64], index: 21, kind: input, shape index: {}]   ;;  %s1663_s22 = inlined_call_operand.vmem [shape: f32[1,64], index: 22, kind: input, shape index: {}]   ;;  %s1664_s24 = inlined_call_operand.hbm [shape: f32[8,8], index: 24, kind: output, shape index: {}]   ;;  %s1665_s23 = inlined_call_operand.<no memory space> [shape: f32[1,1], index: 23, kind: input, shape index: {}]  }
   0x1   :  { %1668 = sst [smem:[#allocation25_spill]] %s1641_s0  ;;  %v29_v0 = vstv %s1660_s19  ;;  %v31_v1 = vstv %s1665_s23 }
   0x2   :  { %1669 = sst [smem:[#allocation26_spill]] %s1642_s1  ;;  %30 = vst [vmem:[#allocation2] sm:$0x1] %v29_v0 }
   0x3   :  { %1670 = sst [smem:[#allocation27_spill]] %s1643_s2  ;;  %32 = vst [vmem:[#allocation3] sm:$0x1] %v31_v1 }
   0x4   :  { %1671 = sst [smem:[#allocation28_spill]] %s1644_s3 }
   0x5   :  { %1672 = sst [smem:[#allocation29_spill]] %s1645_s4 }
   0x6   :  { %1673 = sst [smem:[#allocation30_spill]] %s1646_s5 }
   0x7   :  { %1674 = sst [smem:[#allocation31_spill]] %s1647_s6 }
   0x8   :  { %1675 = sst [smem:[#allocation32_spill]] %s1648_s7 }
   0x9   :  { %1676 = sst [smem:[#allocation33_spill]] %s1649_s8 }
   0xa   :  { %33 = vsyncpa [#allocation5], 0 }
   0xb   :  { %34 = vsyncpa [#allocation8], 0 }
   0xc   :  { %35 = vsyncpa [#allocation11], 0 }
   0xd   :  { %36 = vsyncpa [#allocation14], 0 }
   0xe   :  { %37 = vsyncpa [#allocation17], 0  ;;  %s1677_s29 = sld [smem:[#allocation29_spill]] }
  0x14   :  { %s63_s0 = sshll.u32 %s1677_s29, 4  ;;  %s64_s0 = int_to_ptr.hbm [resolvable:$true] %s63_s0 }
  0x15   :  { %38 = vsyncpa [#allocation6], 0  ;;  %s1232_s7 = smov [#allocation7]   ;;  %s1678_s23 = sld [smem:[#allocation32_spill]] }
  0x16   :  { %s65_s30 = sshll.u32 %s1232_s7, 4  ;;  %s1233_s8 = smov [#allocation10]   ;;  %s66_s30 = int_to_ptr.vmem [resolvable:$true] %s65_s30 }
  0x17   :  { %68 = dma.hbm_to_vmem [thread:$0]  %s64_s0, 128, %s66_s30, [#allocation8]  }
  0x18   :  { %s88_s4 = sshll.u32 %s1233_s8, 4  ;;  %s118_s26 = sshll.u32 %s1653_s12, 4  ;;  %s89_s4 = int_to_ptr.vmem [resolvable:$true] %s88_s4  ;;  %s119_s26 = int_to_ptr.hbm [resolvable:$true] %s118_s26 }
  0x19   :  { %s1234_s27 = smov 128   ;;  %s1235_s28 = smov 8  }
  0x1a   :  { %s1679_s29 = sld [smem:[#allocation27_spill]]  ;;  %s1236_s7 = smov [#allocation13]  }
  0x1b   :  { %s86_s25 = sshll.u32 %s1678_s23, 4  ;;  %s120_s30 = sshll.u32 %s1236_s7, 4  ;;  %s87_s25 = int_to_ptr.hbm [resolvable:$true] %s86_s25  ;;  %s121_s30 = int_to_ptr.vmem [resolvable:$true] %s120_s30 }
  0x1c   :  { %94 = dma.hbm_to_vmem [thread:$0]  %s87_s25, 256, %s89_s4, [#allocation11], %s1234_s27, %s1234_s27, %s1235_s28  }
  0x1d   :  { %126 = dma.hbm_to_vmem [thread:$0]  %s119_s26, 1024, %s121_s30, [#allocation14], %s1234_s27, %s1234_s27, %s1235_s28  }
  0x1e   :  { %s1237_s12 = smov [#allocation4]   ;;  %s1680_s8 = sld [smem:[#allocation31_spill]] }
  0x1f   :  { %s49_s19 = sshll.u32 %s1237_s12, 4  ;;  %s103_s5 = sshll.u32 %s1651_s10, 4  ;;  %s50_s19 = int_to_ptr.vmem [resolvable:$true] %s49_s19  ;;  %s104_s5 = int_to_ptr.hbm [resolvable:$true] %s103_s5 }
  0x20   :  { %s47_s0 = sshll.u32 %s1679_s29, 4  ;;  %s1238_s6 = smov [#allocation9]   ;;  %s48_s0 = int_to_ptr.hbm [resolvable:$true] %s47_s0 }
  0x21   :  { %55 = dma.hbm_to_vmem [thread:$0]  %s48_s0, 1024, %s50_s19, [#allocation5], %s1234_s27, %s1234_s27, %s1235_s28  }
  0x22   :  { %s78_s2 = sshll.u32 %s1238_s6, 4  ;;  %s1239_s26 = smov [#allocation12]   ;;  %s79_s2 = int_to_ptr.vmem [resolvable:$true] %s78_s2 }
  0x23   :  { %s105_s29 = sshll.u32 %s1239_s26, 4  ;;  %s133_s12 = sshll.u32 %s1655_s14, 4  ;;  %s106_s29 = int_to_ptr.vmem [resolvable:$true] %s105_s29  ;;  %s134_s12 = int_to_ptr.hbm [resolvable:$true] %s133_s12 }
  0x24   :  { %s76_s1 = sshll.u32 %s1680_s8, 4  ;;  %s156_s10 = sshll.u32 %s1661_s20, 4  ;;  %s77_s1 = int_to_ptr.hbm [resolvable:$true] %s76_s1  ;;  %s157_s10 = int_to_ptr.hbm [resolvable:$true] %s156_s10 }
  0x25   :  { %81 = dma.hbm_to_vmem [thread:$0]  %s77_s1, 128, %s79_s2, [#allocation8]  }
  0x26   :  { %111 = dma.hbm_to_vmem [thread:$0]  %s104_s5, 1024, %s106_s29, [#allocation11], %s1234_s27, %s1234_s27, %s1235_s28  }
  0x27   :  { %s1240_s3 = smov [#allocation15]   ;;  %s1241_s8 = smov [#allocation16]  }
  0x28   :  { %s135_s23 = sshll.u32 %s1240_s3, 4  ;;  %s158_s14 = sshll.u32 %s1241_s8, 4  ;;  %s136_s23 = int_to_ptr.vmem [resolvable:$true] %s135_s23  ;;  %s159_s14 = int_to_ptr.vmem [resolvable:$true] %s158_s14 }
  0x29   :  { %141 = dma.hbm_to_vmem [thread:$0]  %s134_s12, 1024, %s136_s23, [#allocation14], %s1234_s27, %s1234_s27, %s1235_s28  }
  0x2a   :  { %164 = dma.hbm_to_vmem [thread:$0]  %s157_s10, 1024, %s159_s14, [#allocation17], %s1234_s27, %s1234_s27, %s1235_s28  }
  0x2b   :  { %1220 = dma.done.wait [#allocation5], 1024  }
  0x2c   :  { %1221 = vsyncadd [#allocation5], 4294966272 }
  0x2d   :  { %1222 = dma.done.wait [#allocation8], 256  }
  0x2e   :  { %1223 = vsyncadd [#allocation8], 4294967040 }
  0x2f   :  { %1224 = dma.done.wait [#allocation11], 1280  }
  0x30   :  { %1225 = vsyncadd [#allocation11], 4294966016 }
  0x31   :  { %1226 = dma.done.wait [#allocation14], 2048  }
  0x32   :  { %1227 = vsyncadd [#allocation14], 4294965248 }
  0x33   :  { %1228 = dma.done.wait [#allocation17], 1024  }
  0x34   :  { %1229 = vsyncadd [#allocation17], 4294966272  ;;  %vm212_vm0 = vcmask 1043456   ;;  %vm208_vm1 = vcmask 31744   ;;  %s1681_s25 = sld [smem:[#allocation33_spill]]  ;;  %v205_v4 = vld [vmem:[#allocation10 + $0x8] sm:$0xff] }
  0x35   :  { %s1682_s6 = sld [smem:[#allocation26_spill]]  ;;  %v204_v5 = vld [vmem:[#allocation10] sm:$0xff]  ;;  %vm236_vm2 = vcmask 130048   ;;  %v273_v7 = vld [vmem:[#allocation12 + $0x38] sm:$0xff]  ;;  %v271_v9 = vld [vmem:[#allocation12 + $0x28] sm:$0xff]  ;;  %vm278_vm3 = vcmask 523264  }
  0x36   :  { %s1683_s2 = sld [smem:[#allocation25_spill]]  ;;  %290 = vmatpush.msra.mxu2 %v273_v7  ;;  %v272_v8 = vld [vmem:[#allocation12 + $0x30] sm:$0xff]  ;;  %v270_v10 = vld [vmem:[#allocation12 + $0x20] sm:$0xff]  ;;  %v269_v11 = vld [vmem:[#allocation12 + $0x18] sm:$0xff]  ;;  %vm439_vm4 = vcmask 64512   ;;  %s919_s10 = sshll.u32 %s1664_s24, 4  ;;  %s920_s10 = int_to_ptr.hbm [resolvable:$true] %s919_s10 }
  0x37   :  { %v268_v12 = vld [vmem:[#allocation12 + $0x10] sm:$0xff]  ;;  %v267_v13 = vld [vmem:[#allocation12 + $0x8] sm:$0xff]  ;;  %v266_v14 = vld [vmem:[#allocation12] sm:$0xff]  ;;  %s1684_s19 = sld [smem:[#allocation28_spill]] }
  0x38   :  { %291 = vmatpush.msra.mxu2 %v272_v8  ;;  %v310_v15 = vld [vmem:[#allocation13 + $0x38] sm:$0xff]  ;;  %v309_v16 = vld [vmem:[#allocation13 + $0x30] sm:$0xff]  ;;  %v308_v17 = vld [vmem:[#allocation13 + $0x28] sm:$0xff]  ;;  %s1685_s23 = sld [smem:[#allocation30_spill]] }
  0x39   :  { %326 = vmatpush.msra.mxu3 %v310_v15  ;;  %v307_v18 = vld [vmem:[#allocation13 + $0x20] sm:$0xff]  ;;  %v306_v19 = vld [vmem:[#allocation13 + $0x18] sm:$0xff]  ;;  %v305_v26 = vld [vmem:[#allocation13 + $0x10] sm:$0xff] }
  0x3a   :  { %v207_v2 = vld [vmem:[%s1681_s25] sm:$0xf]  ;;  %292 = vmatpush.msra.mxu2 %v271_v9  ;;  %v304_v27 = vld [vmem:[#allocation13 + $0x8] sm:$0xff]  ;;  %v352_v30 = vld [vmem:[#allocation15 + $0x30] sm:$0xff] }
  0x3b   :  { %v206_v3 = vld [vmem:[%s1682_s6] sm:$0xff]  ;;  %933 = vmatpush.msk.msra.mxu0 %vm212_vm0, %v207_v2  ;;  %327 = vmatpush.msra.mxu3 %v309_v16  ;;  %v351_v31 = vld [vmem:[#allocation15 + $0x28] sm:$0xff]  ;;  %v348_v34 = vld [vmem:[#allocation15 + $0x10] sm:$0xff] }
  0x3c   :  { %934 = vmatmul.msk.f32.vlgmr.msra.gmra.mxu0 %vm208_vm1, %v206_v3  ;;  %v203_v6 = vld [vmem:[%s1683_s2] sm:$0xff]  ;;  %293 = vmatpush.msra.mxu2 %v270_v10  ;;  %v347_v35 = vld [vmem:[#allocation15 + $0x8] sm:$0xff]  ;;  %v340_v43 = vld [vmem:[#allocation4 + $0x10] sm:$0xff] }
  0x3d   :  { %254 = vmatpush.msrb.mxu0 %v205_v4  ;;  %328 = vmatpush.msra.mxu3 %v308_v17  ;;  %v988_v21 = vld [vmem:[%s1650_s9] ss:$0 sm:$0xff]  ;;  %v303_v28 = vld [vmem:[#allocation13] sm:$0xff]  ;;  %v339_v42 = vld [vmem:[#allocation4 + $0x8] sm:$0xff] }
  0x3e   :  { %294 = vmatpush.msra.mxu2 %v269_v11  ;;  %v353_v29 = vld [vmem:[#allocation15 + $0x38] sm:$0xff]  ;;  %v350_v32 = vld [vmem:[#allocation15 + $0x20] sm:$0xff]  ;;  %v343_v50 = vld [vmem:[#allocation4 + $0x28] sm:$0xff] }
  0x3f   :  { %255 = vmatpush.msrb.mxu0 %v204_v5  ;;  %329 = vmatpush.msra.mxu3 %v307_v18  ;;  %v349_v33 = vld [vmem:[#allocation15 + $0x18] sm:$0xff]  ;;  %v346_v36 = vld [vmem:[#allocation15] sm:$0xff]  ;;  %v344_v52 = vld [vmem:[#allocation4 + $0x30] sm:$0xff] }
  0x40   :  { %295 = vmatpush.msra.mxu2 %v268_v12  ;;  %v989_v37 = vld [vmem:[%s1652_s11] ss:$0 sm:$0xff]  ;;  %v338_v41 = vld [vmem:[#allocation4] sm:$0xff]  ;;  %v433_v53 = vld [vmem:[%s1684_s19 + $0x10] sm:$0xff] }
  0x41   :  { %330 = vmatpush.msra.mxu3 %v306_v19  ;;  %390 = vmatpush.msra.mxu0 %v353_v29  ;;  %v341_v44 = vld [vmem:[#allocation4 + $0x18] sm:$0xff]  ;;  %v342_v46 = vld [vmem:[#allocation4 + $0x20] sm:$0xff]  ;;  %v527_v56 = vld [vmem:[%s1657_s16 + $0x70] sm:$0xff] }
  0x42   :  { %296 = vmatpush.msra.mxu2 %v267_v13  ;;  %v990_v45 = vld [vmem:[%s1654_s13] ss:$0 sm:$0xff]  ;;  %v432_v51 = vld [vmem:[%s1684_s19 + $0x8] sm:$0xff]  ;;  %v434_v55 = vld [vmem:[%s1684_s19 + $0x18] sm:$0xff] }
  0x43   :  { %331 = vmatpush.msra.mxu3 %v305_v26  ;;  %391 = vmatpush.msra.mxu0 %v352_v30  ;;  %v431_v49 = vld [vmem:[%s1684_s19] sm:$0xff]  ;;  %v528_v57 = vld [vmem:[%s1657_s16 + $0x78] sm:$0xff]  ;;  %v526_v59 = vld [vmem:[%s1657_s16 + $0x68] sm:$0xff] }
  0x44   :  { %935 = vmatmul.msk.f32.vlgmr.msrb.gmra.mxu0 %vm236_vm2, %v203_v6  ;;  %297 = vmatpush.msra.mxu2 %v266_v14  ;;  %v345_v54 = vld [vmem:[#allocation4 + $0x38] sm:$0xff]  ;;  %v523_v60 = vld [vmem:[%s1657_s16 + $0x50] sm:$0xff]  ;;  %v522_v63 = vld [vmem:[%s1657_s16 + $0x48] sm:$0xff] }
  0x45   :  { %332 = vmatpush.msra.mxu3 %v304_v27  ;;  %392 = vmatpush.msra.mxu0 %v351_v31  ;;  %v525_v58 = vld [vmem:[%s1657_s16 + $0x60] sm:$0xff]  ;;  %v524_v61 = vld [vmem:[%s1657_s16 + $0x58] sm:$0xff]  ;;  %v436_v1 = vld [vmem:[%s1684_s19 + $0x28] sm:$0xff] }
  0x46   :  { %567 = vmatpush.msrb.mxu2 %v527_v56  ;;  %v521_v62 = vld [vmem:[%s1657_s16 + $0x40] sm:$0xff]  ;;  %v437_v2 = vld [vmem:[%s1684_s19 + $0x30] sm:$0xff]  ;;  %v438_v3 = vld [vmem:[%s1684_s19 + $0x38] sm:$0xff] }
  0x47   :  { %333 = vmatpush.msra.mxu3 %v303_v28  ;;  %393 = vmatpush.msra.mxu0 %v350_v32  ;;  %v435_v0 = vld [vmem:[%s1684_s19 + $0x20] sm:$0xff]  ;;  %v519_v4 = vld [vmem:[%s1657_s16 + $0x30] sm:$0xff]  ;;  %v520_v5 = vld [vmem:[%s1657_s16 + $0x38] sm:$0xff] }
  0x48   :  { %568 = vmatpush.msrb.mxu2 %v525_v58  ;;  %v517_v6 = vld [vmem:[%s1657_s16 + $0x20] sm:$0xff]  ;;  %v518_v7 = vld [vmem:[%s1657_s16 + $0x28] sm:$0xff]  ;;  %v515_v8 = vld [vmem:[%s1657_s16 + $0x10] sm:$0xff] }
  0x49   :  { %394 = vmatpush.msra.mxu0 %v349_v33  ;;  %608 = vmatpush.msrb.mxu3 %v528_v57  ;;  %v516_v9 = vld [vmem:[%s1657_s16 + $0x18] sm:$0xff]  ;;  %v513_v10 = vld [vmem:[%s1657_s16] sm:$0xff]  ;;  %v514_v11 = vld [vmem:[%s1657_s16 + $0x8] sm:$0xff] }
  0x4a   :  { %569 = vmatpush.msrb.mxu2 %v523_v60  ;;  %v991_v14 = vld [vmem:[%s1656_s15] ss:$0 sm:$0xff] }
  0x4b   :  { %395 = vmatpush.msra.mxu0 %v348_v34  ;;  %609 = vmatpush.msrb.mxu3 %v526_v59  ;;  %v529_v58 = vld [vmem:[%s1658_s17] sm:$0x3] }
  0x4c   :  { %570 = vmatpush.msrb.mxu2 %v521_v62  ;;  %v1554_v59 = vperm.slane %v529_v58, 0  ;;  %v1556_v60 = vperm.slane %v529_v58, 1 }
  0x4d   :  { %396 = vmatpush.msra.mxu0 %v347_v35  ;;  %610 = vmatpush.msrb.mxu3 %v524_v61  ;;  %v657_v61 = vld [vmem:[%s1659_s18] sm:$0x3] }
  0x4e   :  { %571 = vmatpush.msrb.mxu2 %v519_v4 }
  0x4f   :  { %397 = vmatpush.msra.mxu0 %v346_v36  ;;  %611 = vmatpush.msrb.mxu3 %v522_v63 }
  0x50   :  { %938 = vmatmul.msk.f32.vlgmr.msra.gmra.mxu0 %vm278_vm3, %v338_v41  ;;  %572 = vmatpush.msrb.mxu2 %v517_v6 }
  0x51   :  { %612 = vmatpush.msrb.mxu3 %v520_v5 }
  0x52   :  { %573 = vmatpush.msrb.mxu2 %v515_v8 }
  0x53   :  { %613 = vmatpush.msrb.mxu3 %v518_v7 }
  0x54   :  { %574 = vmatpush.msrb.mxu2 %v513_v10 }
  0x55   :  { %614 = vmatpush.msrb.mxu3 %v516_v9 }
  0x57   :  { %615 = vmatpush.msrb.mxu3 %v514_v11 }
  0x58   :  { %939 = vmatmul.msk.f32.gmra.mxu0 %vm278_vm3, %v339_v42 }
  0x60   :  { %940 = vmatmul.msk.f32.gmra.mxu0 %vm278_vm3, %v340_v43 }
  0x68   :  { %941 = vmatmul.msk.f32.gmra.mxu0 %vm278_vm3, %v341_v44 }
  0x70   :  { %942 = vmatmul.msk.f32.gmra.mxu0 %vm278_vm3, %v342_v46 }
  0x78   :  { %943 = vmatmul.msk.f32.gmra.mxu0 %vm278_vm3, %v343_v50 }
  0x80   :  { %944 = vmatmul.msk.f32.gmra.mxu0 %vm278_vm3, %v344_v52 }
  0x88   :  { %945 = vmatmul.msk.f32.gmra.mxu0 %vm278_vm3, %v345_v54 }
  0xb9   :  { %v233_v20 = vpop.f32.mrf.mxu0 }
  0xc1   :  { %v257_v22 = vpop.f32.mrf.mxu0 }
  0xc2   :  { %v258_v23 = vadd.f32 %v257_v22, %v233_v20 }
  0xc4   :  { %v264_v24 = vadd.f32 %v988_v21, %v258_v23 }
  0xc6   :  { %v265_v25 = vmax.f32 %v264_v24, 0.0 }
  0xc8   :  { %936 = vmatmul.msk.f32.vlgmr.msra.gmra.mxu2 %vm278_vm3, %v265_v25 }
  0xcd   :  { %v399_v12 = vpop.f32.mrf.mxu0 }
  0xce   :  { %v400_v15 = vadd.f32 %v991_v14, %v399_v12 }
  0xd0   :  { %v423_v17 = vmax.f32 %v400_v15, 0.0 }
  0xd5   :  { %v402_v13 = vpop.f32.mrf.mxu0 }
  0xd6   :  { %v403_v20 = vadd.f32 %v991_v14, %v402_v13 }
  0xd8   :  { %v424_v21 = vmax.f32 %v403_v20, 0.0 }
  0xdd   :  { %v405_v16 = vpop.f32.mrf.mxu0 }
  0xde   :  { %v406_v25 = vadd.f32 %v991_v14, %v405_v16 }
  0xe0   :  { %v425_v26 = vmax.f32 %v406_v25, 0.0 }
  0xe5   :  { %v408_v22 = vpop.f32.mrf.mxu0 }
  0xe6   :  { %v409_v30 = vadd.f32 %v991_v14, %v408_v22 }
  0xe8   :  { %v426_v31 = vmax.f32 %v409_v30, 0.0 }
  0xed   :  { %v411_v28 = vpop.f32.mrf.mxu0 }
  0xee   :  { %v412_v34 = vadd.f32 %v991_v14, %v411_v28 }
  0xf0   :  { %v427_v36 = vmax.f32 %v412_v34, 0.0 }
  0xf5   :  { %v414_v35 = vpop.f32.mrf.mxu0 }
 0x14b   :  { %v299_v38 = vpop.f32.mrf.mxu2 }
 0x14c   :  { %v300_v39 = vadd.f32 %v989_v37, %v299_v38 }
 0x14e   :  { %v302_v40 = vmax.f32 %v300_v39, 0.0  ;;  %v415_v39 = vadd.f32 %v991_v14, %v414_v35 }
 0x150   :  { %937 = vmatmul.msk.f32.vlgmr.msra.gmra.mxu3 %vm278_vm3, %v302_v40  ;;  %v417_v40 = vpop.f32.mrf.mxu0  ;;  %v428_v41 = vmax.f32 %v415_v39, 0.0 }
 0x151   :  { %v418_v44 = vadd.f32 %v991_v14, %v417_v40 }
 0x158   :  { %v420_v46 = vpop.f32.mrf.mxu0 }
 0x159   :  { %v421_v50 = vadd.f32 %v991_v14, %v420_v46 }
 0x1d3   :  { %v335_v47 = vpop.f32.mrf.mxu3 }
 0x1d4   :  { %v1442_v48 = vadd.f32 %v990_v45, %v335_v47  ;;  %v429_v45 = vmax.f32 %v418_v44, 0.0 }
 0x1d6   :  { %479 = vmatpush.msra.mxu1 %v1442_v48 }
 0x1d7   :  { %946 = vmatmul.msk.f32.vlgmr.msra.gmra.mxu1 %vm439_vm4, %v431_v49 }
 0x1df   :  { %947 = vmatmul.msk.f32.gmra.mxu1 %vm439_vm4, %v432_v51  ;;  %v430_v51 = vmax.f32 %v421_v50, 0.0 }
 0x1e7   :  { %948 = vmatmul.msk.f32.gmra.mxu1 %vm439_vm4, %v433_v53 }
 0x1ef   :  { %949 = vmatmul.msk.f32.gmra.mxu1 %vm439_vm4, %v434_v55 }
 0x1f7   :  { %950 = vmatmul.msk.f32.gmra.mxu1 %vm439_vm4, %v435_v0 }
 0x1ff   :  { %951 = vmatmul.msk.f32.gmra.mxu1 %vm439_vm4, %v436_v1 }
 0x207   :  { %952 = vmatmul.msk.f32.gmra.mxu1 %vm439_vm4, %v437_v2  ;;  %v1563_v2 = vperm.slane %v657_v61, 0 }
 0x20f   :  { %953 = vmatmul.msk.f32.gmra.mxu1 %vm439_vm4, %v438_v3  ;;  %v1565_v3 = vperm.slane %v657_v61, 1 }
 0x254   :  { %v481_v18 = vpop.f32.mrf.mxu1 }
 0x255   :  { %v505_v19 = vmul.f32 %v481_v18, %v423_v17 }
 0x257   :  { %954 = vmatmul.msk.f32.vlgmr.msrb.gmra.mxu2 %vm278_vm3, %v505_v19  ;;  %962 = vmatmul.msk.f32.vlgmr.msrb.gmra.mxu3 %vm278_vm3, %v505_v19 }
 0x25c   :  { %v484_v23 = vpop.f32.mrf.mxu1 }
 0x25d   :  { %v506_v24 = vmul.f32 %v484_v23, %v424_v21 }
 0x25f   :  { %955 = vmatmul.msk.f32.gmra.mxu2 %vm278_vm3, %v506_v24  ;;  %963 = vmatmul.msk.f32.gmra.mxu3 %vm278_vm3, %v506_v24 }
 0x264   :  { %v487_v27 = vpop.f32.mrf.mxu1 }
 0x265   :  { %v507_v29 = vmul.f32 %v487_v27, %v425_v26 }
 0x267   :  { %956 = vmatmul.msk.f32.gmra.mxu2 %vm278_vm3, %v507_v29  ;;  %964 = vmatmul.msk.f32.gmra.mxu3 %vm278_vm3, %v507_v29 }
 0x26c   :  { %v490_v32 = vpop.f32.mrf.mxu1 }
 0x26d   :  { %v508_v33 = vmul.f32 %v490_v32, %v426_v31 }
 0x26f   :  { %957 = vmatmul.msk.f32.gmra.mxu2 %vm278_vm3, %v508_v33  ;;  %965 = vmatmul.msk.f32.gmra.mxu3 %vm278_vm3, %v508_v33 }
 0x274   :  { %v493_v37 = vpop.f32.mrf.mxu1 }
 0x275   :  { %v509_v38 = vmul.f32 %v493_v37, %v427_v36 }
 0x277   :  { %958 = vmatmul.msk.f32.gmra.mxu2 %vm278_vm3, %v509_v38  ;;  %966 = vmatmul.msk.f32.gmra.mxu3 %vm278_vm3, %v509_v38 }
 0x27c   :  { %v496_v42 = vpop.f32.mrf.mxu1 }
 0x27d   :  { %v510_v43 = vmul.f32 %v496_v42, %v428_v41 }
 0x27f   :  { %959 = vmatmul.msk.f32.gmra.mxu2 %vm278_vm3, %v510_v43  ;;  %967 = vmatmul.msk.f32.gmra.mxu3 %vm278_vm3, %v510_v43 }
 0x284   :  { %v499_v47 = vpop.f32.mrf.mxu1 }
 0x285   :  { %v511_v49 = vmul.f32 %v499_v47, %v429_v45 }
 0x287   :  { %960 = vmatmul.msk.f32.gmra.mxu2 %vm278_vm3, %v511_v49  ;;  %968 = vmatmul.msk.f32.gmra.mxu3 %vm278_vm3, %v511_v49 }
 0x28c   :  { %v502_v52 = vpop.f32.mrf.mxu1 }
 0x28d   :  { %v512_v53 = vmul.f32 %v502_v52, %v430_v51 }
 0x28f   :  { %961 = vmatmul.msk.f32.gmra.mxu2 %vm278_vm3, %v512_v53  ;;  %969 = vmatmul.msk.f32.gmra.mxu3 %vm278_vm3, %v512_v53 }
 0x2da   :  { %v576_v54 = vpop.f32.mrf.mxu2  ;;  %v617_v55 = vpop.f32.mrf.mxu3 }
 0x2db   :  { %v577_v31 = vadd.f32 %v576_v54, %v1554_v59  ;;  %v618_v32 = vadd.f32 %v617_v55, %v1556_v60 }
 0x2dd   :  { %v641_v37 = vmax.f32 %v577_v31, 0.0  ;;  %v642_v38 = vmax.f32 %v618_v32, 0.0 }
 0x2df   :  { %v663_v44 = vmul.f32 %v1563_v2, %v641_v37  ;;  %v664_v45 = vmul.f32 %v1565_v3, %v642_v38  ;;  %v718_v38 = vld [vmem:[%s1685_s23 + $0x10] sm:$0xff] }
 0x2e1   :  { %v679_v51 = vadd.f32 %v664_v45, %v663_v44 }
 0x2e2   :  { %v1547_v56 = vpop.f32.mrf.mxu2  ;;  %v1549_v57 = vpop.f32.mrf.mxu3 }
 0x2e3   :  { %v580_v61 = vadd.f32 %v1547_v56, %v1554_v59  ;;  %v1242_v56 = vmov 0  }
 0x2e4   :  { %987 = vset.pattern.permute.xlu2 %v1242_v56  ;;  %986 = vset.pattern.permute.xlu1 %v1242_v56 }
 0x2e5   :  { %985 = vset.pattern.permute.xlu0 %v1242_v56  ;;  %v995_v56 = vld [vmem:[#allocation3] ss:$0 sm:$0xff] }
 0x2ea   :  { %v582_v62 = vpop.f32.mrf.mxu2  ;;  %v623_v63 = vpop.f32.mrf.mxu3 }
 0x2eb   :  { %v583_v0 = vadd.f32 %v582_v62, %v1554_v59  ;;  %v624_v1 = vadd.f32 %v623_v63, %v1556_v60  ;;  %v621_v62 = vadd.f32 %v1549_v57, %v1556_v60  ;;  %v992_v57 = vld [vmem:[#allocation2] ss:$0 sm:$0xff] }
 0x2ed   :  { %v645_v4 = vmax.f32 %v583_v0, 0.0  ;;  %v646_v5 = vmax.f32 %v624_v1, 0.0 }
 0x2ef   :  { %v667_v6 = vmul.f32 %v1563_v2, %v645_v4  ;;  %v668_v7 = vmul.f32 %v1565_v3, %v646_v5  ;;  %v643_v5 = vmax.f32 %v580_v61, 0.0 }
 0x2f1   :  { %v685_v8 = vadd.f32 %v668_v7, %v667_v6  ;;  %v644_v6 = vmax.f32 %v621_v62, 0.0 }
 0x2f2   :  { %v585_v9 = vpop.f32.mrf.mxu2  ;;  %v626_v10 = vpop.f32.mrf.mxu3 }
 0x2f3   :  { %v586_v11 = vadd.f32 %v585_v9, %v1554_v59  ;;  %v627_v12 = vadd.f32 %v626_v10, %v1556_v60  ;;  %686 = vadd.xlane.f32.xlu2 %v685_v8  ;;  %v665_v8 = vmul.f32 %v1563_v2, %v643_v5  ;;  %v666_v9 = vmul.f32 %v1565_v3, %v644_v6  ;;  %v819_v5 = vld [vmem:[#allocation9] sm:$0xff] }
 0x2f4   :  { %838 = vmatpush.msrb.mxu0 %v819_v5 }
 0x2f5   :  { %v647_v13 = vmax.f32 %v586_v11, 0.0  ;;  %v648_v14 = vmax.f32 %v627_v12, 0.0  ;;  %v682_v10 = vadd.f32 %v666_v9, %v665_v8  ;;  %v993_v9 = vld [vmem:[%s1662_s21] ss:$0 sm:$0xff]  ;;  %s1243_s21 = smov [#allocation18]  }
 0x2f7   :  { %v669_v15 = vmul.f32 %v1563_v2, %v647_v13  ;;  %v670_v16 = vmul.f32 %v1565_v3, %v648_v14 }
 0x2f9   :  { %v688_v17 = vadd.f32 %v670_v16, %v669_v15 }
 0x2fa   :  { %v588_v18 = vpop.f32.mrf.mxu2  ;;  %v629_v19 = vpop.f32.mrf.mxu3 }
 0x2fb   :  { %v589_v20 = vadd.f32 %v588_v18, %v1554_v59  ;;  %v630_v21 = vadd.f32 %v629_v19, %v1556_v60  ;;  %689 = vadd.xlane.f32.xlu2 %v688_v17 }
 0x2fd   :  { %v649_v22 = vmax.f32 %v589_v20, 0.0  ;;  %v650_v23 = vmax.f32 %v630_v21, 0.0 }
 0x2ff   :  { %v671_v24 = vmul.f32 %v1563_v2, %v649_v22  ;;  %v672_v25 = vmul.f32 %v1565_v3, %v650_v23 }
 0x301   :  { %v691_v26 = vadd.f32 %v672_v25, %v671_v24  ;;  %v723_v24 = vld [vmem:[%s1685_s23 + $0x38] sm:$0xff] }
 0x302   :  { %v591_v27 = vpop.f32.mrf.mxu2  ;;  %v632_v28 = vpop.f32.mrf.mxu3 }
 0x303   :  { %v592_v29 = vadd.f32 %v591_v27, %v1554_v59  ;;  %v633_v30 = vadd.f32 %v632_v28, %v1556_v60  ;;  %692 = vadd.xlane.f32.xlu1 %v691_v26 }
 0x305   :  { %v651_v33 = vmax.f32 %v592_v29, 0.0  ;;  %v652_v34 = vmax.f32 %v633_v30, 0.0  ;;  %v722_v29 = vld [vmem:[%s1685_s23 + $0x30] sm:$0xff]  ;;  %v721_v30 = vld [vmem:[%s1685_s23 + $0x28] sm:$0xff] }
 0x307   :  { %v673_v35 = vmul.f32 %v1563_v2, %v651_v33  ;;  %v674_v36 = vmul.f32 %v1565_v3, %v652_v34  ;;  %v720_v34 = vld [vmem:[%s1685_s23 + $0x20] sm:$0xff] }
 0x309   :  { %v694_v39 = vadd.f32 %v674_v36, %v673_v35  ;;  %v719_v36 = vld [vmem:[%s1685_s23 + $0x18] sm:$0xff] }
 0x30a   :  { %v594_v40 = vpop.f32.mrf.mxu2  ;;  %v635_v41 = vpop.f32.mrf.mxu3 }
 0x30b   :  { %v595_v42 = vadd.f32 %v594_v40, %v1554_v59  ;;  %v636_v43 = vadd.f32 %v635_v41, %v1556_v60  ;;  %695 = vadd.xlane.f32.xlu1 %v694_v39  ;;  %v717_v40 = vld [vmem:[%s1685_s23 + $0x8] sm:$0xff] }
 0x30d   :  { %v653_v46 = vmax.f32 %v595_v42, 0.0  ;;  %v654_v47 = vmax.f32 %v636_v43, 0.0  ;;  %v716_v43 = vld [vmem:[%s1685_s23] sm:$0xff] }
 0x30f   :  { %v675_v49 = vmul.f32 %v1563_v2, %v653_v46  ;;  %v676_v50 = vmul.f32 %v1565_v3, %v654_v47  ;;  %v715_v47 = vld [vmem:[#allocation7] sm:$0xff] }
 0x311   :  { %v697_v52 = vadd.f32 %v676_v50, %v675_v49  ;;  %v850_v49 = vld [vmem:[#allocation16 + $0x38] sm:$0xff]  ;;  %v849_v50 = vld [vmem:[#allocation16 + $0x30] sm:$0xff] }
 0x312   :  { %v597_v53 = vpop.f32.mrf.mxu2  ;;  %v638_v54 = vpop.f32.mrf.mxu3 }
 0x313   :  { %v598_v55 = vadd.f32 %v597_v53, %v1554_v59  ;;  %v639_v58 = vadd.f32 %v638_v54, %v1556_v60  ;;  %680 = vadd.xlane.f32.xlu1 %v679_v51  ;;  %698 = vadd.xlane.f32.xlu0 %v697_v52  ;;  %v848_v51 = vld [vmem:[#allocation16 + $0x28] sm:$0xff]  ;;  %v847_v52 = vld [vmem:[#allocation16 + $0x20] sm:$0xff]  ;;  %v846_v53 = vld [vmem:[#allocation16 + $0x18] sm:$0xff] }
 0x314   :  { %v845_v54 = vld [vmem:[#allocation16 + $0x10] sm:$0xff] }
 0x315   :  { %v655_v63 = vmax.f32 %v598_v55, 0.0  ;;  %v656_v0 = vmax.f32 %v639_v58, 0.0  ;;  %v844_v55 = vld [vmem:[#allocation16 + $0x8] sm:$0xff]  ;;  %v843_v58 = vld [vmem:[#allocation16] sm:$0xff] }
 0x317   :  { %v677_v1 = vmul.f32 %v1563_v2, %v655_v63  ;;  %v678_v4 = vmul.f32 %v1565_v3, %v656_v0  ;;  %v994_v63 = vld [vmem:[%s1663_s22] ss:$0 sm:$0xff]  ;;  %s917_s22 = sshll.u32 %s1243_s21, 4  ;;  %s918_s22 = int_to_ptr.vmem [resolvable:$true] %s917_s22 }
 0x319   :  { %v700_v7 = vadd.f32 %v678_v4, %v677_v1 }
 0x31b   :  { %701 = vadd.xlane.f32.xlu0 %v700_v7 }
 0x323   :  { %683 = vadd.xlane.f32.xlu0 %v682_v10 }
 0x366   :  { %v687_v13 = vpop.xlane.xlu2 %686 }
 0x367   :  { %v709_v15 = vadd.f32 %v992_v57, %v687_v13 }
 0x36e   :  { %v690_v19 = vpop.xlane.xlu2 %689 }
 0x36f   :  { %v710_v20 = vadd.f32 %v992_v57, %v690_v19 }
 0x376   :  { %v693_v59 = vpop.xlane.xlu1 %692 }
 0x377   :  { %v711_v60 = vadd.f32 %v992_v57, %v693_v59 }
 0x379   :  { %746 = vperm.xlu2 %987, %v711_v60  }
 0x37e   :  { %v696_v11 = vpop.xlane.xlu1 %695 }
 0x37f   :  { %v712_v12 = vadd.f32 %v992_v57, %v696_v11 }
 0x381   :  { %751 = vperm.xlu1 %986, %v712_v12  }
 0x386   :  { %v699_v14 = vpop.xlane.xlu0 %698  ;;  %v681_v2 = vpop.xlane.xlu1 %680 }
 0x387   :  { %v713_v16 = vadd.f32 %v992_v57, %v699_v14  ;;  %v707_v17 = vadd.f32 %v992_v57, %v681_v2 }
 0x389   :  { %736 = vperm.xlu1 %986, %v709_v15   ;;  %756 = vperm.xlu0 %985, %v713_v16  }
 0x38e   :  { %v702_v3 = vpop.xlane.xlu0 %701 }
 0x38f   :  { %v714_v18 = vadd.f32 %v992_v57, %v702_v3 }
 0x391   :  { %726 = vperm.xlu1 %986, %v707_v17   ;;  %761 = vperm.xlu2 %987, %v714_v18  }
 0x396   :  { %v684_v21 = vpop.xlane.xlu0 %683 }
 0x397   :  { %v708_v22 = vadd.f32 %v992_v57, %v684_v21 }
 0x399   :  { %741 = vperm.xlu2 %987, %v710_v20  }
 0x3a1   :  { %731 = vperm.xlu2 %987, %v708_v22  }
 0x3d3   :  { %v747_v23 = vpop.permute.xlu2 %746 }
 0x3d4   :  { %v768_v37 = vmul.f32 %v747_v23, %v720_v34 }
 0x3eb   :  { %v762_v25 = vpop.permute.xlu2 %761 }
 0x3ec   :  { %v771_v26 = vmul.f32 %v762_v25, %v723_v24 }
 0x3ee   :  { %783 = vmatpush.msrb.mxu1 %v771_v26 }
 0x3f3   :  { %v752_v27 = vpop.permute.xlu1 %751  ;;  %v742_v28 = vpop.permute.xlu2 %741 }
 0x3f4   :  { %v769_v35 = vmul.f32 %v752_v27, %v721_v30  ;;  %v767_v39 = vmul.f32 %v742_v28, %v719_v36 }
 0x3fb   :  { %v737_v31 = vpop.permute.xlu1 %736  ;;  %v757_v32 = vpop.permute.xlu0 %756 }
 0x3fc   :  { %v770_v33 = vmul.f32 %v757_v32, %v722_v29  ;;  %v732_v41 = vpop.permute.xlu2 %731  ;;  %v766_v42 = vmul.f32 %v737_v31, %v718_v38 }
 0x3fd   :  { %v765_v45 = vmul.f32 %v732_v41, %v717_v40 }
 0x3fe   :  { %784 = vmatpush.msrb.mxu1 %v770_v33 }
 0x400   :  { %785 = vmatpush.msrb.mxu1 %v769_v35 }
 0x402   :  { %786 = vmatpush.msrb.mxu1 %v768_v37 }
 0x403   :  { %v727_v44 = vpop.permute.xlu1 %726 }
 0x404   :  { %787 = vmatpush.msrb.mxu1 %v767_v39  ;;  %v764_v46 = vmul.f32 %v727_v44, %v716_v43 }
 0x406   :  { %788 = vmatpush.msrb.mxu1 %v766_v42 }
 0x408   :  { %789 = vmatpush.msrb.mxu1 %v765_v45 }
 0x40a   :  { %790 = vmatpush.msrb.mxu1 %v764_v46 }
 0x40b   :  { %970 = vmatmul.msk.f32.vlgmr.msrb.gmra.mxu1 %vm278_vm3, %v715_v47 }
 0x40c   :  { %862 = vmatpush.msra.mxu1 %v850_v49 }
 0x40e   :  { %863 = vmatpush.msra.mxu1 %v849_v50 }
 0x410   :  { %864 = vmatpush.msra.mxu1 %v848_v51 }
 0x412   :  { %865 = vmatpush.msra.mxu1 %v847_v52 }
 0x414   :  { %866 = vmatpush.msra.mxu1 %v846_v53 }
 0x416   :  { %867 = vmatpush.msra.mxu1 %v845_v54 }
 0x418   :  { %868 = vmatpush.msra.mxu1 %v844_v55 }
 0x41a   :  { %869 = vmatpush.msra.mxu1 %v843_v58 }
 0x41b   :  { %972 = vmatmul.msk.f32.vlgmr.msra.gmra.mxu1 %vm278_vm3, %v1442_v48 }
 0x488   :  { %v792_v61 = vpop.f32.mrf.mxu1 }
 0x489   :  { %v795_v62 = vsel %vm439_vm4, %v792_v61, -inf }
 0x48a   :  { %796 = vmax.xlane.f32.xlu0 %v795_v62 }
 0x498   :  { %v871_v0 = vpop.f32.mrf.mxu1 }
 0x499   :  { %v895_v1 = vmul.f32 %v994_v63, %v871_v0  ;;  %v878_v57 = vmul.f32 %v993_v9, %v871_v0 }
 0x49b   :  { %v896_v4 = vsel %vm278_vm3, %v895_v1, 0.0  ;;  %v879_v11 = vsel %vm278_vm3, %v878_v57, 0.0 }
 0x49c   :  { %897 = vadd.xlane.f32.xlu1 %v896_v4 }
 0x4fd   :  { %v797_v6 = vpop.xlane.xlu0 %796 }
 0x4fe   :  { %v798_v7 = vsub.f32 %v792_v61, %v797_v6 }
 0x500   :  { %v799_v8 = vmul.f32 1.442695, %v798_v7 }
 0x502   :  { %996 = vpow2.f32 %v799_v8 }
 0x508   :  { %v997_v48 = vpop.eup %996 }
 0x509   :  { %v801_v10 = vsel %vm439_vm4, %v997_v48, 0.0 }
 0x50a   :  { %802 = vadd.xlane.f32.xlu2 %v801_v10 }
 0x50f   :  { %v898_v59 = vpop.xlane.xlu1 %897 }
 0x510   :  { %v903_v60 = vadd.f32 %v995_v56, %v898_v59 }
 0x512   :  { %907 = vperm.xlu0 %985, %v903_v60   ;;  %880 = vadd.xlane.f32.xlu2 %v879_v11 }
 0x57d   :  { %v803_v12 = vpop.xlane.xlu2 %802 }
 0x57e   :  { %998 = vrcp.f32 %v803_v12  ;;  %v815_v16 = vand.u32 2147483648, %v803_v12  ;;  %v813_v3 = vand.u32 2147483647, %v803_v12  ;;  %vm809_vm6 = vweird.f32 %v803_v12 }
 0x580   :  { %v816_v18 = vor.u32 1.1754944e-38, %v815_v16  ;;  %vm814_vm8 = vcmp.eq.f32.partialorder %v813_v3, 8.507059e+37 }
 0x584   :  { %v999_v13 = vpop.eup %998  ;;  %v908_v34 = vpop.permute.xlu0 %907 }
 0x585   :  { %v805_v14 = vmul.f32 %v999_v13, %v803_v12  ;;  %vm810_vm5 = vweird.f32 %v999_v13  ;;  %v881_v22 = vpop.xlane.xlu2 %880 }
 0x586   :  { %vm811_vm7 = vmor %vm809_vm6, %vm810_vm5  ;;  %v883_v23 = vand.u32 2147483647, %v881_v22  ;;  %v882_v30 = vmax.f32 %v881_v22, 0.0 }
 0x587   :  { %v806_v15 = vsub.f32 1.0, %v805_v14 }
 0x588   :  { %v884_v24 = vsub.f32 0.0, %v883_v23 }
 0x589   :  { %v807_v2 = vmul.f32 %v999_v13, %v806_v15 }
 0x58a   :  { %v885_v25 = vmul.f32 1.442695, %v884_v24 }
 0x58b   :  { %v808_v17 = vadd.f32 %v999_v13, %v807_v2 }
 0x58c   :  { %1000 = vpow2.f32 %v885_v25 }
 0x58d   :  { %v812_v19 = vsel %vm811_vm7, %v999_v13, %v808_v17 }
 0x58e   :  { %v817_v20 = vsel %vm814_vm8, %v816_v18, %v812_v19 }
 0x58f   :  { %v818_v21 = vmul.f32 %v997_v48, %v817_v20 }
 0x591   :  { %971 = vmatmul.msk.f32.vlgmr.msrb.gmra.mxu0 %vm439_vm4, %v818_v21 }
 0x592   :  { %v1001_v26 = vpop.eup %1000 }
 0x593   :  { %v887_v27 = vadd.f32 1.0, %v1001_v26 }
 0x595   :  { %1002 = vlog2.f32 %v887_v27 }
 0x59b   :  { %v1003_v28 = vpop.eup %1002 }
 0x59c   :  { %v889_v29 = vmul.f32 0.6931472, %v1003_v28 }
 0x59e   :  { %v890_v31 = vadd.f32 %v889_v29, %v882_v30 }
 0x60e   :  { %v840_v32 = vpop.f32.mrf.mxu0 }
 0x60f   :  { %v904_v33 = vmul.f32 %v890_v31, %v840_v32 }
 0x611   :  { %v910_v35 = vadd.f32 %v908_v34, %v904_v33 }
 0x613   :  { %911 = vst.msk [vmem:[#allocation18] sm:$0xff] %vm439_vm4, %v910_v35 }
 0x614   :  { %922 = dma.vmem_to_hbm [thread:$0]  %s918_s22, 128, %s920_s10, [#allocation6]  }
 0x615   :  { %1230 = dma.done.wait [#allocation6], 128  }
 0x616   :  { %1231 = vsyncadd [#allocation6], 4294967168 }
 0x617   :  { %927 = vsyncpa [#allocation5], 1 }
 0x618   :  { %928 = vsyncpa [#allocation8], 1 }
 0x619   :  { %929 = vsyncpa [#allocation11], 1 }
 0x61a   :  { %930 = vsyncpa [#allocation14], 1 }
 0x61b   :  { %931 = vsyncpa [#allocation17], 1 }
 0x61c   :  { %932 = vsyncpa [#allocation6], 1 }

</bundles_post_ra>
